<compile_context>
chip_gen: v6e
topology: v6e:2x2x1
jax: 0.10.0
libtpu: 0.0.40
codegen_flags: <defaults>
</compile_context>

<pallas_src>
import functools

import jax
import jax.numpy as jnp
from jax.experimental import pallas as pl
from jax.experimental.pallas import tpu as pltpu

BERT_HIDDEN_SIZE = 768  # `BERT_VOCAO_SIZE` hard-coded in the PyTorch module


# ----------------------------------------------------------------------------
# Pallas kernel: TaggingFNNDecoder forward
#   logits -> mask penalty -> softmax (prob, bf16) -> per-block CE partials
# ----------------------------------------------------------------------------
def _tagging_decoder_kernel(pad_id, n_rows, h_ref, w_ref, b_ref, mask_ref,
                            lab_ref, prob_ref, parts_ref):
    # h:[bm,H] bf16   w:[H,T] bf16 (resident)   b:[1,T] f32
    # mask:[bm,1] f32   labels:[bm,1] i32
    bm = h_ref.shape[0]

    h = h_ref[...]
    w = w_ref[...]
    b = b_ref[...]

    # Linear layer on the MXU, f32 accumulation.
    logits = jnp.dot(h, w, preferred_element_type=jnp.float32) + b   # [bm, T]

    # logits += (1 - mask).unsqueeze(-1) * -1e32   (broadcast over tags)
    mask = mask_ref[...]
    logits = logits + (1.0 - mask) * jnp.float32(-1e32)

    # Numerically stable softmax over the tag axis; divide on the (idle) EUP.
    m = jnp.max(logits, axis=-1, keepdims=True)           # [bm, 1]
    e = jnp.exp(logits - m)                                # [bm, T]
    s = jnp.sum(e, axis=-1, keepdims=True)                 # [bm, 1]
    prob_ref[...] = (e * pl.reciprocal(s, approx=True)).astype(prob_ref.dtype)

    # Cross-entropy pieces: nll = logsumexp(logits) - logits[label]
    logz = m + jnp.log(s)                                  # [bm, 1] (exact)
    labels = lab_ref[...]                                  # [bm, 1] int32
    tag_idx = jax.lax.broadcasted_iota(jnp.int32, logits.shape, 1)
    picked = jnp.sum(jnp.where(tag_idx == labels, logits, 0.0),
                     axis=-1, keepdims=True)               # [bm, 1]
    nll = logz - picked                                    # [bm, 1]

    # Ignore rows whose label == ignore_index AND rows past N (the last grid
    # block may read unspecified data beyond the array end — guard with the
    # global row index so garbage never reaches the sums; jnp.where keeps any
    # NaN in the unselected branch from propagating).
    row = pl.program_id(0) * bm + jax.lax.broadcasted_iota(jnp.int32, (bm, 1), 0)
    valid = jnp.logical_and(labels != pad_id, row < n_rows)
    nll_sum = jnp.sum(jnp.where(valid, nll, 0.0))          # scalar f32
    val_sum = jnp.sum(valid.astype(jnp.float32))           # scalar f32

    # One lane-dense (8,128) tile per block: lane 0 -> sum(nll), lane 1 -> count.
    lane = jax.lax.broadcasted_iota(jnp.int32, (8, 128), 1)
    parts_ref[...] = jnp.where(lane == 0, nll_sum,
                               jnp.where(lane == 1, val_sum, 0.0))


# ----------------------------------------------------------------------------
# Wrapper: TaggingFNNDecoder.forward(hiddens, mask, labels)
# ----------------------------------------------------------------------------
def tagging_fnn_decoder(hiddens, mask, weight, bias, labels=None,
                        pad_id=0, block_rows=512):
    B, S, H = hiddens.shape
    T = weight.shape[1]
    N = B * S

    # No host-side padding / output slicing: grid = cdiv(N, bm); the final
    # partial block is handled in-kernel (CE guard) and by Pallas (prob
    # writeback of OOB rows is dropped).  block_rows must stay a multiple of 8.
    bm = block_rows if N >= block_rows else N
    num_blocks = pl.cdiv(N, bm)

    # bf16 matmul operands; softmax / loss math stays f32 inside the kernel.
    h2 = hiddens.reshape(N, H).astype(jnp.bfloat16)
    mask2 = mask.reshape(N, 1).astype(jnp.float32)
    lab_src = labels if labels is not None else jnp.full((B, S), pad_id, jnp.int32)
    lab2 = lab_src.reshape(N, 1).astype(jnp.int32)

    w2 = weight.astype(jnp.bfloat16)
    b2 = bias.reshape(1, T).astype(jnp.float32)

    kernel = functools.partial(_tagging_decoder_kernel, pad_id, N)

    prob_flat, parts = pl.pallas_call(
        kernel,
        out_shape=(jax.ShapeDtypeStruct((N, T), jnp.bfloat16),
                   jax.ShapeDtypeStruct((num_blocks * 8, 128), jnp.float32)),
        grid_spec=pltpu.PrefetchScalarGridSpec(
            num_scalar_prefetch=0,
            grid=(num_blocks,),
            in_specs=[
                pl.BlockSpec((bm, H), lambda i: (i, 0)),   # hiddens bf16
                pl.BlockSpec((H, T), lambda i: (0, 0)),    # weight (resident)
                pl.BlockSpec((1, T), lambda i: (0, 0)),    # bias (resident)
                pl.BlockSpec((bm, 1), lambda i: (i, 0)),   # mask
                pl.BlockSpec((bm, 1), lambda i: (i, 0)),   # labels
            ],
            out_specs=[
                pl.BlockSpec((bm, T), lambda i: (i, 0)),   # prob (bf16)
                pl.BlockSpec((8, 128), lambda i: (i, 0)),  # CE partial sums
            ],
        ),
        compiler_params=pltpu.CompilerParams(
            dimension_semantics=("parallel",)),
    )(h2, w2, b2, mask2, lab2)

    prob = prob_flat.reshape(B, S, T)
    if labels is None:
        return (prob,)

    # CrossEntropyLoss(ignore_index=pad_id, reduction='mean') from block partials.
    parts3 = parts.reshape(num_blocks, 8, 128)
    loss_num = jnp.sum(parts3[:, 0, 0])
    loss_den = jnp.sum(parts3[:, 0, 1])
    loss = loss_num / jnp.maximum(loss_den, 1.0)
    return (prob, loss)


# ----------------------------------------------------------------------------
# Pure_BERT.forward (synthetic BERT hidden states + decoder kernel)
# ----------------------------------------------------------------------------
def pure_bert_forward(params, input_ids, tag_mask, tag_ids, pad_id):
    # TODO(synk): pretrained bert-base-chinese encoder + HF tokenizer are
    # external checkpoints; hidden_states[12] is synthesized via a
    # deterministic bf16 embedding lookup instead (gather left to XLA — this
    # is a stand-in, so the per-row DMA-gather fusion suggested in review is
    # not applied here).
    hiddens = params["bert_embed"][input_ids]       # [B, S, 768] bf16
    # nn.Dropout -> identity (eval)
    return tagging_fnn_decoder(
        hiddens, tag_mask,
        params["out_w"], params["out_b"],
        labels=tag_ids, pad_id=pad_id)


def init_params(key, vocab_size, num_tags):
    k1, k2, k3 = jax.random.split(key, 3)
    bound = 1.0 / (BERT_HIDDEN_SIZE ** 0.5)
    return {
        "bert_embed": (jax.random.normal(
            k1, (vocab_size, BERT_HIDDEN_SIZE), jnp.float32) * 0.02
        ).astype(jnp.bfloat16),
        "out_w": jax.random.uniform(
            k2, (BERT_HIDDEN_SIZE, num_tags), jnp.float32, -bound, bound),
        "out_b": jax.random.uniform(
            k3, (num_tags,), jnp.float32, -bound, bound),
    }


if __name__ == "__main__":
    key = jax.random.PRNGKey(0)
    B, S = 2, 8
    NUM_TAGS = 32
    TAG_PAD_IDX = 0
    VOCAB = 100

    kp, ki, kl = jax.random.split(key, 3)
    params = init_params(kp, VOCAB, NUM_TAGS)

    input_ids = jax.random.randint(ki, (B, S), 0, VOCAB, dtype=jnp.int32)
    lengths = jnp.array([8, 5], dtype=jnp.int32)
    pos = jnp.arange(S)[None, :]
    tag_mask = (pos < lengths[:, None]).astype(jnp.float32)        # [B, S]
    tag_ids = jax.random.randint(kl, (B, S), 1, NUM_TAGS, dtype=jnp.int32)
    tag_ids = jnp.where(tag_mask > 0, tag_ids, TAG_PAD_IDX)        # pad label on padding

    prob, loss = pure_bert_forward(params, input_ids, tag_mask, tag_ids,
                                   TAG_PAD_IDX)
    jax.block_until_ready((prob, loss))

    # --- pure-JAX reference for the decoder math (lenient: bf16 matmul) ---
    h_f32 = params["bert_embed"][input_ids].astype(jnp.float32)
    logits_r = h_f32 @ params["out_w"] + params["out_b"]
    logits_r = logits_r + (1.0 - tag_mask)[..., None] * jnp.float32(-1e32)
    prob_r = jax.nn.softmax(logits_r, axis=-1)
    lse_r = jax.nn.logsumexp(logits_r, axis=-1)
    picked_r = jnp.take_along_axis(logits_r, tag_ids[..., None], axis=-1)[..., 0]
    valid_r = (tag_ids != TAG_PAD_IDX).astype(jnp.float32)
    loss_r = jnp.sum((lse_r - picked_r) * valid_r) / jnp.maximum(jnp.sum(valid_r), 1.0)

    assert prob.shape == (B, S, NUM_TAGS)
    assert bool(jnp.all(jnp.isfinite(prob.astype(jnp.float32))))
    assert bool(jnp.isfinite(loss))
    assert float(jnp.max(jnp.abs(prob.astype(jnp.float32) - prob_r))) < 2e-2
    assert abs(float(loss) - float(loss_r)) < 5e-2
    print("KERNEL_OK")
</pallas_src>

<mosaic_0001>
module attributes {stable_mosaic.version = 11 : i64} {
  func.func @_tagging_decoder_kernel(%arg0: i32, %arg1: memref<16x768xbf16, #tpu.memory_space<vmem>>, %arg2: memref<768x32xbf16, #tpu.memory_space<vmem>>, %arg3: memref<1x32xf32, #tpu.memory_space<vmem>>, %arg4: memref<16x1xf32, #tpu.memory_space<vmem>>, %arg5: memref<16x1xi32, #tpu.memory_space<vmem>>, %arg6: memref<16x32xbf16, #tpu.memory_space<vmem>>, %arg7: memref<8x128xf32, #tpu.memory_space<vmem>>) attributes {dimension_semantics = [#tpu.dimension_semantics<parallel>], iteration_bounds = array<i64: 1>, scalar_prefetch = 0 : i64, scratch_operands = 0 : i64, tpu.core_type = #tpu.core_type<tc>, window_params = [{transform_indices = @transform_0, window_bounds = array<i64: 16, 768>}, {pipeline_mode = #tpu.pipeline_mode<synchronous>, transform_indices = @transform_1, window_bounds = array<i64: 768, 32>}, {pipeline_mode = #tpu.pipeline_mode<synchronous>, transform_indices = @transform_2, window_bounds = array<i64: 1, 32>}, {transform_indices = @transform_3, window_bounds = array<i64: 16, 1>}, {transform_indices = @transform_4, window_bounds = array<i64: 16, 1>}, {transform_indices = @transform_5, window_bounds = array<i64: 16, 32>}, {transform_indices = @transform_6, window_bounds = array<i64: 8, 128>}]} {
    %c0 = arith.constant 0 : index
    %c0_0 = arith.constant 0 : index
    %0 = vector.load %arg1[%c0, %c0_0] : memref<16x768xbf16, #tpu.memory_space<vmem>>, vector<16x768xbf16>
    %c0_1 = arith.constant 0 : index
    %c0_2 = arith.constant 0 : index
    %1 = vector.load %arg2[%c0_1, %c0_2] : memref<768x32xbf16, #tpu.memory_space<vmem>>, vector<768x32xbf16>
    %c0_3 = arith.constant 0 : index
    %c0_4 = arith.constant 0 : index
    %2 = vector.load %arg3[%c0_3, %c0_4] : memref<1x32xf32, #tpu.memory_space<vmem>>, vector<1x32xf32>
    %cst = arith.constant dense<0.000000e+00> : vector<16x32xf32>
    %3 = tpu.matmul %0, %1, %cst {dimension_numbers = #tpu.dot_dimension_numbers<[1], [0], [0], [1], [0, 0, 1, 1], [], []>} : vector<16x768xbf16>, vector<768x32xbf16>, vector<16x32xf32> -> vector<16x32xf32>
    %4 = vector.broadcast %2 : vector<1x32xf32> to vector<16x32xf32>
    %5 = arith.addf %3, %4 : vector<16x32xf32>
    %c0_5 = arith.constant 0 : index
    %c0_6 = arith.constant 0 : index
    %6 = vector.load %arg4[%c0_5, %c0_6] : memref<16x1xf32, #tpu.memory_space<vmem>>, vector<16x1xf32>
    %cst_7 = arith.constant 1.000000e+00 : f32
    %7 = vector.broadcast %cst_7 : f32 to vector<16x1xf32>
    %8 = arith.subf %7, %6 : vector<16x1xf32>
    %cst_8 = arith.constant -1.000000e+32 : f32
    %9 = vector.broadcast %cst_8 : f32 to vector<16x1xf32>
    %10 = arith.mulf %8, %9 : vector<16x1xf32>
    %11 = vector.broadcast %10 : vector<16x1xf32> to vector<16x32xf32>
    %12 = arith.addf %5, %11 : vector<16x32xf32>
    %cst_9 = arith.constant dense<0xFF800000> : vector<16xf32>
    %13 = vector.multi_reduction <maximumf>, %12, %cst_9 [1] : vector<16x32xf32> to vector<16xf32>
    %14 = vector.shape_cast %13 : vector<16xf32> to vector<16x1xf32>
    %15 = vector.broadcast %14 : vector<16x1xf32> to vector<16x32xf32>
    %16 = arith.subf %12, %15 : vector<16x32xf32>
    %17 = math.exp %16 : vector<16x32xf32>
    %cst_10 = arith.constant dense<0.000000e+00> : vector<16xf32>
    %18 = vector.multi_reduction <add>, %17, %cst_10 [1] : vector<16x32xf32> to vector<16xf32>
    %19 = vector.shape_cast %18 : vector<16xf32> to vector<16x1xf32>
    %20 = tpu.reciprocal %19 {approx = true} : vector<16x1xf32> -> vector<16x1xf32>
    %21 = vector.broadcast %20 : vector<16x1xf32> to vector<16x32xf32>
    %22 = arith.mulf %17, %21 : vector<16x32xf32>
    %23 = arith.truncf %22 : vector<16x32xf32> to vector<16x32xbf16>
    %c0_11 = arith.constant 0 : index
    %c0_12 = arith.constant 0 : index
    %24 = vector.load %arg6[%c0_11, %c0_12] : memref<16x32xbf16, #tpu.memory_space<vmem>>, vector<16x32xbf16>
    tpu.vector_store %arg6[%c0_11, %c0_12], %23 {strides = array<i32>} : memref<16x32xbf16, #tpu.memory_space<vmem>>, vector<16x32xbf16>,
    %25 = math.log %19 : vector<16x1xf32>
    %26 = arith.addf %14, %25 : vector<16x1xf32>
    %c0_13 = arith.constant 0 : index
    %c0_14 = arith.constant 0 : index
    %27 = vector.load %arg5[%c0_13, %c0_14] : memref<16x1xi32, #tpu.memory_space<vmem>>, vector<16x1xi32>
    %28 = tpu.iota {dimensions = array<i32: 1>} : vector<16x32xi32>
    %29 = vector.broadcast %27 : vector<16x1xi32> to vector<16x32xi32>
    %30 = arith.cmpi eq, %28, %29 : vector<16x32xi32>
    %cst_15 = arith.constant 0.000000e+00 : f32
    %31 = vector.broadcast %cst_15 : f32 to vector<16x32xf32>
    %32 = arith.select %30, %12, %31 : vector<16x32xi1>, vector<16x32xf32>
    %cst_16 = arith.constant dense<0.000000e+00> : vector<16xf32>
    %33 = vector.multi_reduction <add>, %32, %cst_16 [1] : vector<16x32xf32> to vector<16xf32>
    %34 = vector.shape_cast %33 : vector<16xf32> to vector<16x1xf32>
    %35 = arith.subf %26, %34 : vector<16x1xf32>
    %c16_i32 = arith.constant 16 : i32
    %36 = arith.muli %arg0, %c16_i32 : i32
    %37 = tpu.iota {dimensions = array<i32: 0>} : vector<16x1xi32>
    %38 = vector.broadcast %36 : i32 to vector<16x1xi32>
    %39 = arith.addi %38, %37 : vector<16x1xi32>
    %c0_i32 = arith.constant 0 : i32
    %40 = vector.broadcast %c0_i32 : i32 to vector<16x1xi32>
    %41 = arith.cmpi ne, %27, %40 : vector<16x1xi32>
    %c16_i32_17 = arith.constant 16 : i32
    %42 = vector.broadcast %c16_i32_17 : i32 to vector<16x1xi32>
    %43 = arith.cmpi slt, %39, %42 : vector<16x1xi32>
    %44 = arith.andi %41, %43 : vector<16x1xi1>
    %cst_18 = arith.constant 0.000000e+00 : f32
    %45 = vector.broadcast %cst_18 : f32 to vector<16x1xf32>
    %46 = arith.select %44, %35, %45 : vector<16x1xi1>, vector<16x1xf32>
    %47 = vector.shape_cast %46 : vector<16x1xf32> to vector<1x16x1xf32>
    %cst_19 = arith.constant dense<0.000000e+00> : vector<1xf32>
    %48 = vector.multi_reduction <add>, %47, %cst_19 [1, 2] : vector<1x16x1xf32> to vector<1xf32>
    %49 = vector.shape_cast %48 : vector<1xf32> to vector<1x1x1xf32>
    %50 = vector.extract %49[0, 0, 0] : f32 from vector<1x1x1xf32>
    %51 = arith.extui %44 : vector<16x1xi1> to vector<16x1xi32>
    %52 = arith.sitofp %51 : vector<16x1xi32> to vector<16x1xf32>
    %53 = vector.shape_cast %52 : vector<16x1xf32> to vector<1x16x1xf32>
    %cst_20 = arith.constant dense<0.000000e+00> : vector<1xf32>
    %54 = vector.multi_reduction <add>, %53, %cst_20 [1, 2] : vector<1x16x1xf32> to vector<1xf32>
    %55 = vector.shape_cast %54 : vector<1xf32> to vector<1x1x1xf32>
    %56 = vector.extract %55[0, 0, 0] : f32 from vector<1x1x1xf32>
    %57 = tpu.iota {dimensions = array<i32: 1>} : vector<8x128xi32>
    %c0_i32_21 = arith.constant 0 : i32
    %58 = vector.broadcast %c0_i32_21 : i32 to vector<8x128xi32>
    %59 = arith.cmpi eq, %57, %58 : vector<8x128xi32>
    %c1_i32 = arith.constant 1 : i32
    %60 = vector.broadcast %c1_i32 : i32 to vector<8x128xi32>
    %61 = arith.cmpi eq, %57, %60 : vector<8x128xi32>
    %cst_22 = arith.constant 0.000000e+00 : f32
    %62 = vector.broadcast %56 : f32 to vector<8x128xf32>
    %63 = vector.broadcast %cst_22 : f32 to vector<8x128xf32>
    %64 = arith.select %61, %62, %63 : vector<8x128xi1>, vector<8x128xf32>
    %65 = vector.broadcast %50 : f32 to vector<8x128xf32>
    %66 = arith.select %59, %65, %64 : vector<8x128xi1>, vector<8x128xf32>
    %c0_23 = arith.constant 0 : index
    %c0_24 = arith.constant 0 : index
    %67 = vector.load %arg7[%c0_23, %c0_24] : memref<8x128xf32, #tpu.memory_space<vmem>>, vector<8x128xf32>
    tpu.vector_store %arg7[%c0_23, %c0_24], %66 {strides = array<i32>} : memref<8x128xf32, #tpu.memory_space<vmem>>, vector<8x128xf32>,
    return
  }
  func.func @transform_0(%arg0: i32) -> (i32, i32) {
    %c0_i32 = arith.constant 0 : i32
    %c0_i32_0 = arith.constant 0 : i32
    return %arg0, %c0_i32 : i32, i32
  }
  func.func @transform_1(%arg0: i32) -> (i32, i32) {
    %c0_i32 = arith.constant 0 : i32
    %c0_i32_0 = arith.constant 0 : i32
    %c0_i32_1 = arith.constant 0 : i32
    return %c0_i32, %c0_i32_0 : i32, i32
  }
  func.func @transform_2(%arg0: i32) -> (i32, i32) {
    %c0_i32 = arith.constant 0 : i32
    %c0_i32_0 = arith.constant 0 : i32
    %c0_i32_1 = arith.constant 0 : i32
    return %c0_i32, %c0_i32_0 : i32, i32
  }
  func.func @transform_3(%arg0: i32) -> (i32, i32) {
    %c0_i32 = arith.constant 0 : i32
    %c0_i32_0 = arith.constant 0 : i32
    return %arg0, %c0_i32 : i32, i32
  }
  func.func @transform_4(%arg0: i32) -> (i32, i32) {
    %c0_i32 = arith.constant 0 : i32
    %c0_i32_0 = arith.constant 0 : i32
    return %arg0, %c0_i32 : i32, i32
  }
  func.func @transform_5(%arg0: i32) -> (i32, i32) {
    %c0_i32 = arith.constant 0 : i32
    %c0_i32_0 = arith.constant 0 : i32
    return %arg0, %c0_i32 : i32, i32
  }
  func.func @transform_6(%arg0: i32) -> (i32, i32) {
    %c0_i32 = arith.constant 0 : i32
    %c0_i32_0 = arith.constant 0 : i32
    return %arg0, %c0_i32 : i32, i32
  }
}

</mosaic_0001>

<bundles_post_ra>
// kernel: tpu_custom_call.1
= control target key start
LH: loop header
LB: loop body
LE: loop exit
PB: predicated region body
PF: predicated region fallthrough
CT: control target
= control target key end

     0   :  { %12 = vsyncpa [#allocation3], 0  ;;  %v988_v2 = vmov 0   ;;  %s1230_s0 = inlined_call_operand.vmem [shape: bf16[16,768], index: 0, kind: input, shape index: {}]   ;;  %s1231_s1 = inlined_call_operand.vmem [shape: bf16[768,32], index: 1, kind: input, shape index: {}]   ;;  %s1232_s2 = inlined_call_operand.vmem [shape: f32[1,32], index: 2, kind: input, shape index: {}]   ;;  %s1233_s3 = inlined_call_operand.vmem [shape: f32[16,1], index: 3, kind: input, shape index: {}]   ;;  %s1234_s4 = inlined_call_operand.vmem [shape: s32[16,1], index: 4, kind: input, shape index: {}]   ;;  %s1235_s5 = inlined_call_operand.hbm [shape: bf16[16,32], index: 5, kind: output, shape index: {0}]   ;;  %s1236_s6 = inlined_call_operand.hbm [shape: f32[8,128], index: 6, kind: output, shape index: {1}]  }
   0x1   :  { %v875_v0 = vld [vmem:[%s1231_s1 + $0x78] sm:$0xff]   ;;  %873 = vset.pattern.permute.xlu0 %v988_v2  ;;  %874 = vset.pattern.permute.xlu1 %v988_v2  ;;  %v879_v5 = vld [vmem:[%s1231_s1 + $0x70] sm:$0xff]   ;;  %v883_v9 = vld [vmem:[%s1231_s1 + $0x68] sm:$0xff]  }
   0x2   :  { %v876_v1 = vld [vmem:[%s1231_s1 + $0x38] sm:$0xff]   ;;  %797 = vmatprep.subr.bf16.mxu0 %v875_v0  ;;  %v880_v6 = vld [vmem:[%s1231_s1 + $0x30] sm:$0xff]   ;;  %v884_v10 = vld [vmem:[%s1231_s1 + $0x28] sm:$0xff]  }
   0x3   :  { %v877_v3 = vld [vmem:[%s1231_s1 + $0xf8] sm:$0xff]   ;;  %798 = vmatpush3.bf16.msra.mxu0 %v876_v1  ;;  %v881_v7 = vld [vmem:[%s1231_s1 + $0xf0] sm:$0xff]   ;;  %v885_v11 = vld [vmem:[%s1231_s1 + $0xe8] sm:$0xff]  }
   0x4   :  { %v878_v4 = vld [vmem:[%s1231_s1 + $0xb8] sm:$0xff]   ;;  %819 = vmatprep.subr.bf16.mxu1 %v877_v3  ;;  %799 = vmatprep.subr.bf16.mxu0 %v879_v5  ;;  %v882_v8 = vld [vmem:[%s1231_s1 + $0xb0] sm:$0xff]   ;;  %v886_v12 = vld [vmem:[%s1231_s1 + $0xa8] sm:$0xff]  }
   0x5   :  { %820 = vmatpush3.bf16.msra.mxu1 %v878_v4  ;;  %v887_v13 = vld [vmem:[%s1231_s1 + $0x60] sm:$0xff]   ;;  %v891_v17 = vld [vmem:[%s1231_s1 + $0x58] sm:$0xff]   ;;  %v895_v21 = vld [vmem:[%s1231_s1 + $0x50] sm:$0xff]  }
   0x6   :  { %821 = vmatprep.subr.bf16.mxu1 %v881_v7  ;;  %v888_v14 = vld [vmem:[%s1231_s1 + $0x20] sm:$0xff]   ;;  %v892_v18 = vld [vmem:[%s1231_s1 + $0x18] sm:$0xff]   ;;  %v896_v22 = vld [vmem:[%s1231_s1 + $0x10] sm:$0xff]  }
   0x7   :  { %800 = vmatpush3.bf16.msra.mxu0 %v880_v6  ;;  %v889_v15 = vld [vmem:[%s1231_s1 + $0xe0] sm:$0xff]   ;;  %v893_v19 = vld [vmem:[%s1231_s1 + $0xd8] sm:$0xff]   ;;  %v897_v23 = vld [vmem:[%s1231_s1 + $0xd0] sm:$0xff]  }
   0x8   :  { %801 = vmatprep.subr.bf16.mxu0 %v883_v9  ;;  %v890_v16 = vld [vmem:[%s1231_s1 + $0xa0] sm:$0xff]   ;;  %v894_v20 = vld [vmem:[%s1231_s1 + $0x98] sm:$0xff]   ;;  %v898_v24 = vld [vmem:[%s1231_s1 + $0x90] sm:$0xff]  }
   0x9   :  { %822 = vmatpush3.bf16.msra.mxu1 %v882_v8  ;;  %v899_v25 = vld [vmem:[%s1231_s1 + $0x48] sm:$0xff]   ;;  %v903_v29 = vld [vmem:[%s1231_s1 + $0x40] sm:$0xff]   ;;  %v910_v35 = vld [vmem:[%s1231_s1 + $0x178] sm:$0xff]  }
   0xa   :  { %823 = vmatprep.subr.bf16.mxu1 %v885_v11  ;;  %v900_v26 = vld [vmem:[%s1231_s1 + $0x8] sm:$0xff]   ;;  %v904_v30 = vld [vmem:[%s1231_s1] sm:$0xff]   ;;  %v914_v38 = vld [vmem:[%s1231_s1 + $0x138] sm:$0xff]  }
   0xb   :  { %802 = vmatpush3.bf16.msra.mxu0 %v884_v10  ;;  %v901_v27 = vld [vmem:[%s1231_s1 + $0xc8] sm:$0xff]   ;;  %v905_v31 = vld [vmem:[%s1231_s1 + $0xc0] sm:$0xff]   ;;  %v915_v39 = vld [vmem:[%s1231_s1 + $0x170] sm:$0xff]  }
   0xc   :  { %803 = vmatprep.subr.bf16.mxu0 %v887_v13  ;;  %v902_v28 = vld [vmem:[%s1231_s1 + $0x88] sm:$0xff]   ;;  %v906_v32 = vld [vmem:[%s1230_s0] ss:$24 sps:$4 sm:$0xff]   ;;  %v908_v33 = vld [vmem:[%s1230_s0 + $0x4] ss:$24 sps:$4 sm:$0xff]  }
   0xd   :  { %824 = vmatpush3.bf16.msra.mxu1 %v886_v12  ;;  %v909_v34 = vld [vmem:[%s1231_s1 + $0x80] sm:$0xff]   ;;  %484 = vmatprep.mubr.bf16.mxu0 %v908_v33  ;;  %v916_v40 = vld [vmem:[%s1231_s1 + $0x130] sm:$0xff]   ;;  %v917_v41 = vld [vmem:[%s1231_s1 + $0x168] sm:$0xff]  }
   0xe   :  { %825 = vmatprep.subr.bf16.mxu1 %v889_v15  ;;  %v911_v36 = vld [vmem:[%s1230_s0 + $0x8] ss:$24 sps:$4 sm:$0xff]   ;;  %v913_v37 = vld [vmem:[%s1230_s0 + $0xc] ss:$24 sps:$4 sm:$0xff]   ;;  %v921_v45 = vld [vmem:[%s1231_s1 + $0x158] sm:$0xff]  }
   0xf   :  { %804 = vmatpush3.bf16.msra.mxu0 %v888_v14  ;;  %525 = vmatprep.mubr.bf16.mxu1 %v913_v37  ;;  %v918_v42 = vld [vmem:[%s1231_s1 + $0x128] sm:$0xff]   ;;  %v919_v43 = vld [vmem:[%s1231_s1 + $0x160] sm:$0xff]   ;;  %v922_v46 = vld [vmem:[%s1231_s1 + $0x118] sm:$0xff]  }
  0x10   :  { %805 = vmatprep.subr.bf16.mxu0 %v891_v17  ;;  %v920_v44 = vld [vmem:[%s1231_s1 + $0x120] sm:$0xff]   ;;  %v923_v47 = vld [vmem:[%s1231_s1 + $0x150] sm:$0xff]   ;;  %v576_v50 = vld [vmem:[%s1233_s3 + $0x8] sm:$0xff] }
  0x11   :  { %826 = vmatpush3.bf16.msra.mxu1 %v890_v16  ;;  %v931_v48 = vld [vmem:[%s1230_s0 + $0x14] ss:$24 sps:$4 sm:$0xff]   ;;  %v575_v49 = vld [vmem:[%s1233_s3] sm:$0xff]  ;;  %v578_v52 = vsub.f32 1.0, %v576_v50 }
  0x12   :  { %827 = vmatprep.subr.bf16.mxu1 %v893_v19  ;;  %v577_v51 = vsub.f32 1.0, %v575_v49 }
  0x13   :  { %806 = vmatpush3.bf16.msra.mxu0 %v892_v18 }
  0x14   :  { %807 = vmatprep.subr.bf16.mxu0 %v895_v21 }
  0x15   :  { %828 = vmatpush3.bf16.msra.mxu1 %v894_v20 }
  0x16   :  { %829 = vmatprep.subr.bf16.mxu1 %v897_v23 }
  0x17   :  { %808 = vmatpush3.bf16.msra.mxu0 %v896_v22 }
  0x18   :  { %809 = vmatprep.subr.bf16.mxu0 %v899_v25 }
  0x19   :  { %830 = vmatpush3.bf16.msra.mxu1 %v898_v24 }
  0x1a   :  { %831 = vmatprep.subr.bf16.mxu1 %v901_v27 }
  0x1b   :  { %810 = vmatpush3.bf16.msra.mxu0 %v900_v26 }
  0x1c   :  { %811 = vmatprep.subr.bf16.mxu0 %v903_v29 }
  0x1d   :  { %832 = vmatpush3.bf16.msra.mxu1 %v902_v28 }
  0x1e   :  { %833 = vmatprep.subr.bf16.mxu1 %v905_v31 }
  0x1f   :  { %812 = vmatpush3.bf16.msra.mxu0 %v904_v30 }
  0x20   :  { %841 = vmatprep.subr.bf16.mxu0 %v910_v35 }
  0x21   :  { %834 = vmatpush3.bf16.msra.mxu1 %v909_v34 }
  0x22   :  { %485 = vmatmul.mubr.bf16.vlgmr.msra.gmra.mxu0 %v906_v32 }
  0x23   :  { %842 = vmatpush3.bf16.msra.mxu0 %v914_v38  ;;  %566 = vmatprep.mubr.bf16.mxu0 %v931_v48 }
  0x24   :  { %526 = vmatmul.mubr.bf16.vlgmr.msra.gmra.mxu1 %v911_v36  ;;  %843 = vmatprep.subr.bf16.mxu0 %v915_v39 }
  0x27   :  { %844 = vmatpush3.bf16.msra.mxu0 %v916_v40 }
  0x28   :  { %845 = vmatprep.subr.bf16.mxu0 %v917_v41 }
  0x2b   :  { %846 = vmatpush3.bf16.msra.mxu0 %v918_v42 }
  0x2c   :  { %847 = vmatprep.subr.bf16.mxu0 %v919_v43 }
  0x2f   :  { %848 = vmatpush3.bf16.msra.mxu0 %v920_v44 }
  0x30   :  { %849 = vmatprep.subr.bf16.mxu0 %v921_v45 }
  0x31   :  { %13 = vsyncpa [#allocation5], 0  ;;  %v924_v53 = vld [vmem:[%s1231_s1 + $0x110] sm:$0xff]   ;;  %v925_v54 = vld [vmem:[%s1231_s1 + $0x148] sm:$0xff]   ;;  %v579_v55 = vmul.f32 -1e+32, %v577_v51  ;;  %v635_v36 = vlaneseq }
  0x32   :  { %v580_v56 = vmul.f32 -1e+32, %v578_v52  ;;  %v926_v57 = vld [vmem:[%s1231_s1 + $0x108] sm:$0xff]   ;;  %v927_v58 = vld [vmem:[%s1231_s1 + $0x140] sm:$0xff]   ;;  %vm593_vm0 = vcmask 261120   ;;  %vm624_vm3 = vcmask 257024  }
  0x33   :  { %850 = vmatpush3.bf16.msra.mxu0 %v922_v46  ;;  %583 = vperm.xlu0 %873, %v579_v55   ;;  %v928_v59 = vld [vmem:[%s1231_s1 + $0x100] sm:$0xff]   ;;  %v929_v61 = vld [vmem:[%s1230_s0 + $0x10] ss:$24 sps:$4 sm:$0xff]   ;;  %v1211_v37 = vand.u32 127, %v635_v36  ;;  %vm670_vm6 = vcmask 7168  }
  0x34   :  { %851 = vmatprep.subr.bf16.mxu0 %v923_v47  ;;  %v1197_v60 = vld [vmem:[%s1234_s4] sm:$0xff]  ;;  %v634_v29 = vld [vmem:[%s1234_s4 + $0x8] sm:$0xff]  ;;  %s990_s4 = smov [#allocation2]  }
  0x35   :  { %v736_v4 = vld [vmem:[%s1232_s2] ss:$0 sm:$0xff]  ;;  %vm662_vm4 = vcmp.ne.s32.totalorder %v1197_v60, 0  ;;  %vm663_vm5 = vcmp.ne.s32.totalorder %v634_v29, 0  ;;  %s711_s15 = sshll.u32 %s990_s4, 4  ;;  %s712_s15 = int_to_ptr.vmem [resolvable:$true] %s711_s15 }
  0x36   :  { %s944_s16 = scalar_lea.vmem %s712_s15, 128  ;;  %p949_p1 = scmp.lt.s32.totalorder %s712_s15, %s712_s15 }
  0x37   :  { %852 = vmatpush3.bf16.msra.mxu0 %v924_v53  ;;  %588 = vperm.xlu0 %873, %v580_v56   ;;  %p945_p0 = scmp.ne.s32.totalorder %s712_s15, %s944_s16  ;;  %p950_p2 = scmp.lt.s32.totalorder %s944_s16, %s944_s16 }
  0x38   :  { %853 = vmatprep.subr.bf16.mxu0 %v925_v54 }
  0x39   :  { %p951_p3 = por %p950_p2, %p949_p1 }
  0x3b   :  { %854 = vmatpush3.bf16.msra.mxu0 %v926_v57  ;;  %638 = vperm.xlu0 %873, %v1197_v60   ;;  %p952_p4 = pnand %p951_p3, %p945_p0 }
  0x3c   :  { %855 = vmatprep.subr.bf16.mxu0 %v927_v58 }
  0x3f   :  { %856 = vmatpush3.bf16.msra.mxu0 %v928_v59 }
  0x42   :  { %567 = vmatmul.mubr.bf16.vlgmr.msra.gmra.mxu0 %v929_v61 }
  0xae   :  { %v584_v17 = vpop.permute.xlu0 %583 }
  0xb2   :  { %v589_v26 = vpop.permute.xlu0 %588 }
  0xb6   :  { %v639_v38 = vpop.permute.xlu0 %638 }
  0xb7   :  { %vm643_vm1 = vcmp.eq.s32.totalorder %v1211_v37, %v639_v38 }
  0xe2   :  { %v813_v62 = vpop.f32.mrf.mxu0 }
  0xe4   :  { %v814_v63 = vpop.f32.mrf.mxu0  ;;  %v835_v0 = vpop.f32.mrf.mxu1 }
  0xe5   :  { %v815_v3 = vadd.f32 %v814_v63, %v813_v62 }
  0xe6   :  { %v816_v1 = vpop.f32.mrf.mxu0  ;;  %v836_v2 = vpop.f32.mrf.mxu1 }
  0xe7   :  { %v487_v7 = vadd.f32 %v815_v3, %v736_v4  ;;  %v837_v8 = vadd.f32 %v836_v2, %v835_v0 }
  0xe8   :  { %v817_v5 = vpop.f32.mrf.mxu0  ;;  %v838_v6 = vpop.f32.mrf.mxu1 }
  0xe9   :  { %v818_v9 = vadd.f32 %v817_v5, %v816_v1  ;;  %v528_v13 = vadd.f32 %v837_v8, %v487_v7 }
  0xea   :  { %v839_v10 = vpop.f32.mrf.mxu1 }
  0xeb   :  { %v490_v14 = vadd.f32 %v818_v9, %v736_v4  ;;  %v840_v15 = vadd.f32 %v839_v10, %v838_v6  ;;  %v989_v4 = vmov 0.0  }
  0xec   :  { %v793_v5 = vsel %vm662_vm4, 1.0, %v989_v4  ;;  %v794_v6 = vsel %vm663_vm5, 1.0, %v989_v4 }
  0xed   :  { %v531_v21 = vadd.f32 %v840_v15, %v490_v14  ;;  %v687_v10 = vsel %vm670_vm6, %v793_v5, 0.0 }
 0x102   :  { %v857_v11 = vpop.f32.mrf.mxu0 }
 0x104   :  { %v858_v12 = vpop.f32.mrf.mxu0 }
 0x105   :  { %v859_v16 = vadd.f32 %v858_v12, %v857_v11  ;;  %v688_v11 = vsel %vm670_vm6, %v794_v6, 0.0 }
 0x106   :  { %v860_v18 = vpop.f32.mrf.mxu0  ;;  %v689_v60 = vadd.f32 %v688_v11, %v687_v10 }
 0x107   :  { %v569_v19 = vadd.f32 %v859_v16, %v528_v13 }
 0x108   :  { %v861_v20 = vpop.f32.mrf.mxu0 }
 0x109   :  { %v862_v22 = vadd.f32 %v861_v20, %v860_v18  ;;  %v591_v23 = vadd.f32 %v584_v17, %v569_v19 }
 0x10b   :  { %v572_v24 = vadd.f32 %v862_v22, %v531_v21  ;;  %v594_v25 = vsel %vm593_vm0, %v591_v23, -inf  ;;  %v645_v42 = vsel %vm643_vm1, %v591_v23, 0.0 }
 0x10c   :  { %595 = vmax.xlane.f32.xlu1 %v594_v25  ;;  %v647_v44 = vsel %vm593_vm0, %v645_v42, 0.0 }
 0x10d   :  { %v592_v27 = vadd.f32 %v589_v26, %v572_v24 }
 0x10f   :  { %v597_v28 = vsel %vm593_vm0, %v592_v27, -inf }
 0x110   :  { %598 = vmax.xlane.f32.xlu1 %v597_v28 }
 0x121   :  { %641 = vperm.xlu1 %874, %v634_v29  }
 0x195   :  { %v596_v30 = vpop.xlane.xlu1 %595 }
 0x196   :  { %v600_v31 = vsub.f32 %v591_v23, %v596_v30 }
 0x198   :  { %v602_v32 = vmul.f32 1.442695, %v600_v31 }
 0x199   :  { %v599_v33 = vpop.xlane.xlu1 %598 }
 0x19a   :  { %932 = vpow2.f32 %v602_v32  ;;  %v601_v34 = vsub.f32 %v592_v27, %v599_v33 }
 0x19c   :  { %v604_v35 = vmul.f32 1.442695, %v601_v34 }
 0x19d   :  { %v642_v40 = vpop.permute.xlu1 %641 }
 0x19e   :  { %934 = vpow2.f32 %v604_v35  ;;  %vm644_vm2 = vcmp.eq.s32.totalorder %v1211_v37, %v642_v40 }
 0x19f   :  { %v646_v46 = vsel %vm644_vm2, %v592_v27, 0.0 }
 0x1a0   :  { %v650_v47 = vsel %vm593_vm0, %v646_v46, 0.0 }
 0x1a7   :  { %v933_v39 = vpop.eup %932 }
 0x1a8   :  { %v606_v41 = vsel %vm593_vm0, %v933_v39, 0.0 }
 0x1a9   :  { %607 = vadd.xlane.f32.xlu0 %v606_v41 }
 0x1ab   :  { %v935_v43 = vpop.eup %934 }
 0x1ac   :  { %v609_v45 = vsel %vm593_vm0, %v935_v43, 0.0 }
 0x1ad   :  { %648 = vadd.xlane.f32.xlu0 %v647_v44  ;;  %610 = vadd.xlane.f32.xlu1 %v609_v45 }
 0x1b1   :  { %651 = vadd.xlane.f32.xlu0 %v650_v47 }
 0x232   :  { %v608_v48 = vpop.xlane.xlu0 %607 }
 0x233   :  { %936 = vrcp.f32 %v608_v48 }
 0x234   :  { %938 = vlog2.f32 %v608_v48 }
 0x236   :  { %v611_v49 = vpop.xlane.xlu1 %610  ;;  %v649_v54 = vpop.xlane.xlu0 %648 }
 0x237   :  { %940 = vrcp.f32 %v611_v49 }
 0x238   :  { %942 = vlog2.f32 %v611_v49 }
 0x23a   :  { %v652_v1 = vpop.xlane.xlu0 %651 }
 0x240   :  { %v937_v50 = vpop.eup %936 }
 0x241   :  { %v939_v51 = vpop.eup %938  ;;  %v614_v52 = vmul.f32 %v937_v50, %v933_v39 }
 0x242   :  { %v628_v53 = vmul.f32 0.6931472, %v939_v51 }
 0x243   :  { %v795_v55 = vpack.c.bf16 %v614_v52, %v614_v52 }
 0x244   :  { %v941_v56 = vpop.eup %940  ;;  %v631_v57 = vadd.f32 %v628_v53, %v596_v30 }
 0x245   :  { %v943_v58 = vpop.eup %942  ;;  %v615_v59 = vmul.f32 %v941_v56, %v935_v43  ;;  %625 = vst.msk [vmem:[#allocation2] sm:$0xf] %vm624_vm3, %v795_v55 }
 0x246   :  { %v653_v61 = vsub.f32 %v631_v57, %v649_v54  ;;  %v630_v62 = vmul.f32 0.6931472, %v943_v58 }
 0x247   :  { %v796_v63 = vpack.c.bf16 %v615_v59, %v615_v59 }
 0x248   :  { %v632_v0 = vadd.f32 %v630_v62, %v599_v33  ;;  %v668_v2 = vsel %vm662_vm4, %v653_v61, 0.0 }
 0x249   :  { %626 = vst.msk [vmem:[#allocation2 + $0x4] sm:$0xf] %vm624_vm3, %v796_v63  ;;  %v671_v8 = vsel %vm670_vm6, %v668_v2, 0.0 }
 0x24a   :  { %v654_v3 = vsub.f32 %v632_v0, %v652_v1 }
 0x24c   :  { %v669_v7 = vsel %vm663_vm5, %v654_v3, 0.0 }
 0x24d   :  { %v672_v9 = vsel %vm670_vm6, %v669_v7, 0.0 }
 0x24e   :  { %v673_v12 = vadd.f32 %v672_v9, %v671_v8 }
 0x250   :  { %674 = vadd.xlane.f32.xlu0 %v673_v12 }
 0x254   :  { %690 = vadd.xlane.f32.xlu0 %v689_v60 }
 0x255   :  { %955 = shalt.err (!%p952_p4)
}
 0x256   :  { %s991_s17 = smov 64   ;;  %s992_s18 = smov 4   ;;  %vm700_vm7 = vcmp.eq.s32.totalorder %v1211_v37, 1  ;;  %vm699_vm8 = vcmp.eq.s32.totalorder %v1211_v37, 0 }
 0x257   :  { %717 = dma.vmem_to_hbm [thread:$0]  %s712_s15, 128, %s1235_s5, [#allocation3], %s991_s17, %s991_s17, %s992_s18  }
 0x258   :  { %s993_s5 = smov [#allocation4]  }
 0x259   :  { %s724_s22 = sshll.u32 %s993_s5, 4  ;;  %s725_s22 = int_to_ptr.vmem [resolvable:$true] %s724_s22 }
 0x25a   :  { %s964_s24 = scalar_lea.vmem %s725_s22, 128  ;;  %p969_p6 = scmp.lt.s32.totalorder %s725_s22, %s725_s22 }
 0x25b   :  { %p965_p5 = scmp.ne.s32.totalorder %s725_s22, %s964_s24  ;;  %p970_p7 = scmp.lt.s32.totalorder %s964_s24, %s964_s24 }
 0x25d   :  { %p971_p8 = por %p970_p7, %p969_p6 }
 0x25f   :  { %p972_p9 = pnand %p971_p8, %p965_p5 }
 0x2d9   :  { %v675_v13 = vpop.xlane.xlu0 %674 }
 0x2da   :  { %v676_v14 = vrot.slane %v675_v13, 4 }
 0x2dc   :  { %v677_v15 = vadd.f32 %v676_v14, %v675_v13 }
 0x2dd   :  { %v691_v16 = vpop.xlane.xlu0 %690 }
 0x2de   :  { %v678_v17 = vrot.slane %v677_v15, 2  ;;  %v692_v18 = vrot.slane %v691_v16, 4 }
 0x2e0   :  { %v693_v19 = vadd.f32 %v692_v18, %v691_v16  ;;  %v679_v20 = vadd.f32 %v678_v17, %v677_v15 }
 0x2e2   :  { %v694_v21 = vrot.slane %v693_v19, 2  ;;  %v680_v22 = vrot.slane %v679_v20, 1 }
 0x2e4   :  { %v695_v23 = vadd.f32 %v694_v21, %v693_v19  ;;  %v681_v24 = vadd.f32 %v680_v22, %v679_v20 }
 0x2e6   :  { %863 = vpush %v681_v24  ;;  %v696_v25 = vrot.slane %v695_v23, 1 }
 0x2e8   :  { %v697_v26 = vadd.f32 %v696_v25, %v695_v23 }
 0x2ea   :  { %865 = vpush %v697_v26 }
 0x317   :  { %s864_s21 = spop %863 }
 0x318   :  { %v703_v28 = vstv %s864_s21 }
 0x31b   :  { %s866_s23 = spop %865 }
 0x31c   :  { %v701_v27 = vstv %s866_s23 }
 0x31d   :  { %v702_v29 = vsel %vm700_vm7, %v701_v27, 0.0 }
 0x31e   :  { %v704_v30 = vsel %vm699_vm8, %v703_v28, %v702_v29 }
 0x31f   :  { %705 = vst [vmem:[#allocation4] sm:$0xff] %v704_v30 }
 0x320   :  { %975 = shalt.err (!%p972_p9)
}
 0x321   :  { %727 = dma.vmem_to_hbm [thread:$0]  %s725_s22, 128, %s1236_s6, [#allocation5]  }
 0x322   :  { %984 = dma.done.wait [#allocation3], 128  }
 0x323   :  { %985 = vsyncadd [#allocation3], 4294967168 }
 0x324   :  { %986 = dma.done.wait [#allocation5], 128  }
 0x325   :  { %987 = vsyncadd [#allocation5], 4294967168 }
 0x326   :  { %734 = vsyncpa [#allocation3], 1 }
 0x327   :  { %735 = vsyncpa [#allocation5], 1 }

</bundles_post_ra>
